<compile_context>
chip_gen: v5e
topology: v5e:2x2
jax: 0.10.0
libtpu: 0.0.40
codegen_flags: <defaults>
</compile_context>

<pallas_src>
import functools

import jax
import jax.numpy as jnp
from jax.experimental import pallas as pl
from jax.experimental.pallas import tpu as pltpu


def _round_up(x, m):
    return (x + m - 1) // m * m


def _pick_tile_m(M):
    """Pick (TM, padded_M).  Prefer a TM that divides M exactly so no pad/slice copy
    of the (large) activation is needed; small M just uses one (padded) block."""
    if M <= 1024:
        Mp = _round_up(M, 8)
        return Mp, Mp
    for tm in (512, 448, 392, 384, 320, 256, 224, 192, 160, 128,
               112, 96, 64, 56, 48, 40, 32, 24, 16, 8):
        if M % tm == 0:
            return tm, M
    Mp = _round_up(M, 256)
    return 256, Mp


def _pick_tile_k(Kp):
    """Kp is already a multiple of 128.  Keep the whole K resident when small."""
    if Kp <= 1024:
        return Kp
    for tk in (512, 384, 256, 128):
        if Kp % tk == 0:
            return tk
    return 128


# ----------------------------------------------------------------------------
# Pallas kernels
# ----------------------------------------------------------------------------

def _mm_bn_act_kernel(*refs, relu, relu_pre_add, has_shortcut):
    """acc += x @ w (bf16 MXU, f32 acc); on the last K step apply
    y = acc*scale + bias ; [relu] ; [+ shortcut] ; [relu] and store."""
    if has_shortcut:
        x_ref, w_ref, s_ref, b_ref, sc_ref, o_ref, acc_ref = refs
    else:
        x_ref, w_ref, s_ref, b_ref, o_ref, acc_ref = refs
        sc_ref = None

    k = pl.program_id(2)

    @pl.when(k == 0)
    def _():
        acc_ref[...] = jnp.zeros_like(acc_ref)

    acc_ref[...] += jnp.dot(x_ref[...], w_ref[...],
                            preferred_element_type=jnp.float32)

    @pl.when(k == pl.num_programs(2) - 1)
    def _():
        y = acc_ref[...] * s_ref[...] + b_ref[...]
        if relu_pre_add:
            y = jnp.maximum(y, 0.0)
        if has_shortcut:
            y = y + sc_ref[...].astype(jnp.float32)
        if relu:
            y = jnp.maximum(y, 0.0)
        o_ref[...] = y.astype(o_ref.dtype)


@functools.partial(jax.jit, static_argnames=("relu", "relu_pre_add", "out_dtype"))
def matmul_bn_act(x, w, scale, bias, shortcut=None, *, relu, relu_pre_add=False,
                  out_dtype=jnp.bfloat16):
    """act((x @ w) * scale + bias [+ shortcut]), x:[M,K], w:[K,N], scale/bias:[N].
    Operands are fed to the MXU in bf16; accumulation and the epilogue are f32."""
    M, K = x.shape
    K2, N = w.shape
    assert K == K2
    Kp = _round_up(K, 128)
    Np = _round_up(N, 128)
    TK = _pick_tile_k(Kp)
    TN = 256 if Np % 256 == 0 else 128
    TM, Mp = _pick_tile_m(M)

    xb = x.astype(jnp.bfloat16)
    wb = w.astype(jnp.bfloat16)
    if (Mp, Kp) != (M, K):
        xb = jnp.pad(xb, ((0, Mp - M), (0, Kp - K)))
    if (Kp, Np) != (K, N):
        wb = jnp.pad(wb, ((0, Kp - K), (0, Np - N)))
    s = scale.astype(jnp.float32)
    b = bias.astype(jnp.float32)
    if Np != N:
        s = jnp.pad(s, (0, Np - N))
        b = jnp.pad(b, (0, Np - N))
    s = s.reshape(1, Np)
    b = b.reshape(1, Np)

    inputs = [xb, wb, s, b]
    in_specs = [
        pl.BlockSpec((TM, TK), lambda i, j, k: (i, k)),
        pl.BlockSpec((TK, TN), lambda i, j, k: (k, j)),
        pl.BlockSpec((1, TN), lambda i, j, k: (0, j)),
        pl.BlockSpec((1, TN), lambda i, j, k: (0, j)),
    ]
    has_shortcut = shortcut is not None
    if has_shortcut:
        sc = shortcut.astype(jnp.bfloat16)
        if (Mp, Np) != (M, N):
            sc = jnp.pad(sc, ((0, Mp - M), (0, Np - N)))
        inputs.append(sc)
        in_specs.append(pl.BlockSpec((TM, TN), lambda i, j, k: (i, j)))

    out = pl.pallas_call(
        functools.partial(_mm_bn_act_kernel, relu=relu,
                          relu_pre_add=relu_pre_add, has_shortcut=has_shortcut),
        out_shape=jax.ShapeDtypeStruct((Mp, Np), out_dtype),
        grid_spec=pltpu.PrefetchScalarGridSpec(
            num_scalar_prefetch=0,
            grid=(Mp // TM, Np // TN, Kp // TK),
            in_specs=in_specs,
            out_specs=pl.BlockSpec((TM, TN), lambda i, j, k: (i, j)),
            scratch_shapes=[pltpu.VMEM((TM, TN), jnp.float32)],
        ),
        compiler_params=pltpu.CompilerParams(
            dimension_semantics=("parallel", "parallel", "arbitrary")),
    )(*inputs)
    if (Mp, Np) != (M, N):
        out = out[:M, :N]
    return out


def _mean_kernel(x_ref, o_ref):
    o_ref[...] = jnp.mean(x_ref[...].astype(jnp.float32), axis=1)


@jax.jit
def global_avgpool(x):
    # x: [N, H, W, C] -> [N, C]   (AvgPool2d(H) when H == W == kernel)
    N, H, W, C = x.shape
    xr = x.reshape(N, H * W, C)
    return pl.pallas_call(
        _mean_kernel,
        out_shape=jax.ShapeDtypeStruct((N, C), jnp.float32),
        grid=(1,),
        in_specs=[pl.BlockSpec((N, H * W, C), lambda i: (0, 0, 0))],
        out_specs=pl.BlockSpec((N, C), lambda i: (0, 0)),
    )(xr)


# ----------------------------------------------------------------------------
# Conv / ConvTranspose / MaxPool wrappers (JAX glue around the Pallas matmul)
# ----------------------------------------------------------------------------

@functools.partial(jax.jit, static_argnames=("stride", "padding", "relu",
                                             "relu_pre_add", "out_dtype"))
def conv2d(x, w, scale, bias, *, stride=1, padding=0, relu=True,
           relu_pre_add=False, shortcut=None, out_dtype=jnp.bfloat16):
    """x: [N,H,W,Cin], w: [KH,KW,Cin,Cout].  BN folded into (scale, bias).
    Optional residual `shortcut` (same shape as output) fused into the epilogue."""
    N, H, W, Cin = x.shape
    KH, KW, _, Cout = w.shape
    if padding:
        x = jnp.pad(x, ((0, 0), (padding, padding), (padding, padding), (0, 0)))
    Hp, Wp = H + 2 * padding, W + 2 * padding
    Ho = (Hp - KH) // stride + 1
    Wo = (Wp - KW) // stride + 1
    if KH == 1 and KW == 1 and stride == 1:
        col = x.reshape(N * Ho * Wo, Cin)
    else:
        taps = [x[:, kh:kh + stride * Ho:stride, kw:kw + stride * Wo:stride, :]
                for kh in range(KH) for kw in range(KW)]
        col = jnp.concatenate(taps, axis=-1).reshape(N * Ho * Wo, KH * KW * Cin)
    sc2 = None if shortcut is None else shortcut.reshape(N * Ho * Wo, Cout)
    out = matmul_bn_act(col, w.reshape(KH * KW * Cin, Cout), scale, bias, sc2,
                        relu=relu, relu_pre_add=relu_pre_add, out_dtype=out_dtype)
    return out.reshape(N, Ho, Wo, Cout)


@functools.partial(jax.jit, static_argnames=("relu", "out_dtype"))
def conv_transpose2d_s2(x, w, scale, bias, *, relu, out_dtype=jnp.bfloat16):
    """ConvTranspose2d with stride=2, output_padding=1 and either (k=3, padding=1)
    or (k=1, padding=0), via stride-phase decomposition — no zero-dilated input, no
    MXU FLOPs on zeros.  w is [KH,KW,Cin,Cout] in gathering layout:
      out[n, 2m+ph, 2q+pw, :] = sum_{dh,dw} x[n, m+dh, q+dw, :] @ w[ph+1-2dh, pw+1-2dw]
    (k=3 case; out-of-range x reads are zero)."""
    N, H, W, Cin = x.shape
    KH, KW, _, Cout = w.shape

    def interleave(p00, p01, p10, p11):
        row0 = jnp.stack([p00, p01], axis=-2)          # [N,H,W,2,C]
        row1 = jnp.stack([p10, p11], axis=-2)
        out = jnp.stack([row0, row1], axis=2)          # [N,H,2,W,2,C]
        return out.reshape(N, 2 * H, 2 * W, Cout)

    if KH == 1:
        # Only even/even output pixels receive input; the rest see BN(0) = folded bias.
        p00 = conv2d(x, w, scale, bias, stride=1, padding=0, relu=relu,
                     out_dtype=out_dtype)
        fill = bias.astype(jnp.float32)
        if relu:
            fill = jnp.maximum(fill, 0.0)
        pfill = jnp.broadcast_to(fill.astype(out_dtype).reshape(1, 1, 1, Cout),
                                 (N, H, W, Cout))
        return interleave(p00, pfill, pfill, pfill)

    assert KH == 3 and KW == 3
    xp = jnp.pad(x, ((0, 0), (0, 1), (0, 1), (0, 0)))  # reads at h=H / w=W -> 0

    def phase(ph, pw):
        dhs = (0,) if ph == 0 else (0, 1)
        dws = (0,) if pw == 0 else (0, 1)
        wk = jnp.stack(
            [jnp.stack([w[ph + 1 - 2 * dh, pw + 1 - 2 * dw] for dw in dws], axis=0)
             for dh in dhs], axis=0)                   # [|dhs|,|dws|,Cin,Cout]
        xin = xp[:, :H + len(dhs) - 1, :W + len(dws) - 1, :]
        return conv2d(xin, wk, scale, bias, stride=1, padding=0, relu=relu,
                      out_dtype=out_dtype)

    return interleave(phase(0, 0), phase(0, 1), phase(1, 0), phase(1, 1))


@jax.jit
def maxpool_3x3_s2_p1(x):
    # Fused pairwise max over the 9 strided views (review-endorsed; XLA fuses the
    # slices + maxima into a single pass — strictly less HBM traffic than a Pallas
    # kernel fed with 9 materialized tap views).
    N, H, W, C = x.shape
    xp = jnp.pad(x, ((0, 0), (1, 1), (1, 1), (0, 0)), constant_values=-jnp.inf)
    Ho = (H + 2 - 3) // 2 + 1
    Wo = (W + 2 - 3) // 2 + 1
    out = None
    for kh in range(3):
        for kw in range(3):
            v = xp[:, kh:kh + 2 * Ho:2, kw:kw + 2 * Wo:2, :]
            out = v if out is None else jnp.maximum(out, v)
    return out


# ----------------------------------------------------------------------------
# Parameter construction (deterministic, mirrors the PyTorch __init__)
# ----------------------------------------------------------------------------

class KeyGen:
    def __init__(self, key):
        self._key = key

    def __call__(self):
        self._key, sub = jax.random.split(self._key)
        return sub


def init_conv(kg, kh, kw, cin, cout):
    w = jax.random.normal(kg(), (kh, kw, cin, cout), jnp.float32)
    return w * (1.0 / float(kh * kw * cin) ** 0.5)


def init_bn(kg, c, eps=1e-5):
    gamma = 1.0 + 0.1 * jax.random.normal(kg(), (c,), jnp.float32)
    beta = 0.1 * jax.random.normal(kg(), (c,), jnp.float32)
    mean = 0.1 * jax.random.normal(kg(), (c,), jnp.float32)
    var = 0.5 + jnp.abs(jax.random.normal(kg(), (c,), jnp.float32))
    scale = gamma / jnp.sqrt(var + eps)
    bias = beta - mean * scale
    return scale, bias


def make_bottleneck(kg, cin, planes, stride, with_down, expansion=4):
    p = {
        "stride": stride,
        "w1": init_conv(kg, 1, 1, cin, planes), "bn1": init_bn(kg, planes),
        "w2": init_conv(kg, 3, 3, planes, planes), "bn2": init_bn(kg, planes),
        "w3": init_conv(kg, 1, 1, planes, planes * expansion),
        "bn3": init_bn(kg, planes * expansion),
        "down_w": None,
    }
    if with_down:
        p["down_w"] = init_conv(kg, 1, 1, cin, planes * expansion)
        p["down_bn"] = init_bn(kg, planes * expansion)
    return p


def make_deconv_bottleneck(kg, cin, planes, expansion, stride, with_up):
    p = {
        "stride": stride, "expansion": expansion,
        "w1": init_conv(kg, 1, 1, cin, planes), "bn1": init_bn(kg, planes),
        "w2": init_conv(kg, 3, 3, planes, planes), "bn2": init_bn(kg, planes),
        "w3": init_conv(kg, 1, 1, planes, planes * expansion),
        "bn3": init_bn(kg, planes * expansion),
        "up_w": None,
    }
    if with_up:
        p["up_w"] = init_conv(kg, 1, 1, cin, planes * expansion)
        p["up_bn"] = init_bn(kg, planes * expansion)
    return p


def make_resnet_params(kg, num_layers, n_classes, expansion=4):
    P = {}
    state = {"in_ch": 64}

    P["conv1_w"] = init_conv(kg, 7, 7, 1, 64)
    P["bn1"] = init_bn(kg, 64)

    def make_downlayer(init_channels, num_layer, stride=1):
        with_down = (stride != 1) or (state["in_ch"] != init_channels * expansion)
        layers = [make_bottleneck(kg, state["in_ch"], init_channels, stride, with_down)]
        state["in_ch"] = init_channels * expansion
        for _ in range(1, num_layer):
            layers.append(make_bottleneck(kg, state["in_ch"], init_channels, 1, False))
        return layers

    P["dlayer1"] = make_downlayer(64, num_layers[0])
    P["dlayer2"] = make_downlayer(128, num_layers[1], 2)
    P["dlayer3"] = make_downlayer(256, num_layers[2], 2)
    P["dlayer4"] = make_downlayer(512, num_layers[3], 2)

    P["fc_w"] = init_conv(kg, 1, 1, 512 * expansion, n_classes).reshape(
        512 * expansion, n_classes)
    P["fc_b"] = 0.1 * jax.random.normal(kg(), (n_classes,), jnp.float32)

    def make_up_block(init_channels, num_layer, stride=1):
        with_up = (stride != 1) or (state["in_ch"] != init_channels * 2)
        layers = []
        for _ in range(1, num_layer):
            layers.append(make_deconv_bottleneck(kg, state["in_ch"], init_channels, 4, 1, False))
        layers.append(make_deconv_bottleneck(kg, state["in_ch"], init_channels, 2, stride, with_up))
        state["in_ch"] = init_channels * 2
        return layers

    P["uplayer1"] = make_up_block(512, 1, 2)
    P["uplayer2"] = make_up_block(256, num_layers[2], 2)
    P["uplayer3"] = make_up_block(128, num_layers[1], 2)
    P["uplayer4"] = make_up_block(64, 2, 2)
    P["uplayer_top"] = make_deconv_bottleneck(kg, state["in_ch"], 64, 1, 2, True)
    P["conv1_1_w"] = init_conv(kg, 1, 1, 64, n_classes)
    return P


# ----------------------------------------------------------------------------
# Forward pass
# ----------------------------------------------------------------------------

def bottleneck_fwd(p, x):
    out = conv2d(x, p["w1"], *p["bn1"], stride=1, padding=0, relu=True)
    out = conv2d(out, p["w2"], *p["bn2"], stride=p["stride"], padding=1, relu=True)
    if p["down_w"] is not None:
        shortcut = conv2d(x, p["down_w"], *p["down_bn"],
                          stride=p["stride"], padding=0, relu=False)
    else:
        shortcut = x
    # conv3 + bn3 + residual-add + ReLU fused in the matmul epilogue.
    return conv2d(out, p["w3"], *p["bn3"], stride=1, padding=0,
                  relu=True, relu_pre_add=False, shortcut=shortcut)


def deconv_bottleneck_fwd(p, x):
    out = conv2d(x, p["w1"], *p["bn1"], stride=1, padding=0, relu=True)
    if p["stride"] == 1:
        out = conv2d(out, p["w2"], *p["bn2"], stride=1, padding=1, relu=True)
    else:
        out = conv_transpose2d_s2(out, p["w2"], *p["bn2"], relu=True)
    if p["up_w"] is not None:
        shortcut = conv_transpose2d_s2(x, p["up_w"], *p["up_bn"], relu=False)
    else:
        shortcut = x
    # conv3 + bn3 + ReLU (per reference DeconvBottleneck) + residual-add + ReLU, fused.
    return conv2d(out, p["w3"], *p["bn3"], stride=1, padding=0,
                  relu=True, relu_pre_add=True, shortcut=shortcut)


def resnet_forward(P, x_nchw):
    n_classes = P["conv1_1_w"].shape[-1]
    x = jnp.transpose(x_nchw, (0, 2, 3, 1)).astype(jnp.bfloat16)  # NCHW -> NHWC bf16

    x = conv2d(x, P["conv1_w"], *P["bn1"], stride=2, padding=3, relu=True)
    x = maxpool_3x3_s2_p1(x)
    for p in P["dlayer1"]:
        x = bottleneck_fwd(p, x)
    for p in P["dlayer2"]:
        x = bottleneck_fwd(p, x)
    for p in P["dlayer3"]:
        x = bottleneck_fwd(p, x)
    for p in P["dlayer4"]:
        x = bottleneck_fwd(p, x)

    # classification head (Dropout2d / Dropout are identity in eval mode)
    y = global_avgpool(x)                                   # AvgPool2d(7) on 7x7 -> [N, 2048]
    y = matmul_bn_act(y, P["fc_w"], jnp.ones((n_classes,), jnp.float32),
                      P["fc_b"], relu=False, out_dtype=jnp.float32)

    # segmentation head
    z = x
    for p in P["uplayer1"]:
        z = deconv_bottleneck_fwd(p, z)
    for p in P["uplayer2"]:
        z = deconv_bottleneck_fwd(p, z)
    for p in P["uplayer3"]:
        z = deconv_bottleneck_fwd(p, z)
    for p in P["uplayer4"]:
        z = deconv_bottleneck_fwd(p, z)
    z = deconv_bottleneck_fwd(P["uplayer_top"], z)
    # conv1_1: ConvTranspose2d(64, n_classes, k=1, s=1) == 1x1 conv; output_size == input size
    z = conv2d(z, P["conv1_1_w"], jnp.ones((n_classes,), jnp.float32),
               jnp.zeros((n_classes,), jnp.float32), stride=1, padding=0,
               relu=False, out_dtype=jnp.float32)
    z = jnp.transpose(z, (0, 3, 1, 2))  # NHWC -> NCHW

    return {"classification": y, "segmentation": z}


# ----------------------------------------------------------------------------
# Main
# ----------------------------------------------------------------------------

if __name__ == "__main__":
    root = jax.random.PRNGKey(0)
    k_params, k_input = jax.random.split(root)

    # Small but valid config: ResNet(Bottleneck, DeconvBottleneck, [1,1,1,1], n_classes=5)
    # Input spatial size must be 224 (fixed by AvgPool2d(224/32) + fc(512*4)).
    num_layers = [1, 1, 1, 1]
    n_classes = 5

    params = make_resnet_params(KeyGen(k_params), num_layers, n_classes)
    x = jax.random.normal(k_input, (1, 1, 224, 224), jnp.float32)  # NCHW, 1 input channel

    out = resnet_forward(params, x)
    out = jax.block_until_ready(out)

    assert out["classification"].shape == (1, n_classes)
    assert out["segmentation"].shape == (1, n_classes, 224, 224)
    assert bool(jnp.all(jnp.isfinite(out["classification"])))
    assert bool(jnp.all(jnp.isfinite(out["segmentation"])))
    print("KERNEL_OK")
</pallas_src>

<mosaic_0001>
module attributes {stable_mosaic.version = 11 : i64} {
  func.func @_mm_bn_act_kernel(%arg0: i32, %arg1: i32, %arg2: i32, %arg3: memref<448x128xbf16, #tpu.memory_space<vmem>>, %arg4: memref<128x128xbf16, #tpu.memory_space<vmem>>, %arg5: memref<1x128xf32, #tpu.memory_space<vmem>>, %arg6: memref<1x128xf32, #tpu.memory_space<vmem>>, %arg7: memref<448x128xbf16, #tpu.memory_space<vmem>>, %arg8: memref<448x128xf32, #tpu.memory_space<vmem>>) attributes {dimension_semantics = [#tpu.dimension_semantics<parallel>, #tpu.dimension_semantics<parallel>, #tpu.dimension_semantics<arbitrary>], iteration_bounds = array<i64: 28, 1, 1>, scalar_prefetch = 0 : i64, scratch_operands = 1 : i64, tpu.core_type = #tpu.core_type<tc>, window_params = [{transform_indices = @transform_0, window_bounds = array<i64: 448, 128>}, {transform_indices = @transform_1, window_bounds = array<i64: 128, 128>}, {transform_indices = @transform_2, window_bounds = array<i64: 1, 128>}, {transform_indices = @transform_3, window_bounds = array<i64: 1, 128>}, {transform_indices = @transform_4, window_bounds = array<i64: 448, 128>}]} {
    %c0_i32 = arith.constant 0 : i32
    %0 = arith.cmpi eq, %arg2, %c0_i32 : i32
    %1 = arith.extui %0 : i1 to i32
    %c0_i32_0 = arith.constant 0 : i32
    %2 = arith.cmpi ne, %1, %c0_i32_0 : i32
    scf.if %2 {
      %cst_10 = arith.constant 0.000000e+00 : f32
      %12 = vector.broadcast %cst_10 : f32 to vector<448x128xf32>
      %c0_11 = arith.constant 0 : index
      %c0_12 = arith.constant 0 : index
      %13 = vector.load %arg8[%c0_11, %c0_12] : memref<448x128xf32, #tpu.memory_space<vmem>>, vector<448x128xf32>
      tpu.vector_store %arg8[%c0_11, %c0_12], %12 {strides = array<i32>} : memref<448x128xf32, #tpu.memory_space<vmem>>, vector<448x128xf32>,
    } else {
    }
    %c0 = arith.constant 0 : index
    %c0_1 = arith.constant 0 : index
    %3 = vector.load %arg8[%c0, %c0_1] : memref<448x128xf32, #tpu.memory_space<vmem>>, vector<448x128xf32>
    %c0_2 = arith.constant 0 : index
    %c0_3 = arith.constant 0 : index
    %4 = vector.load %arg3[%c0_2, %c0_3] : memref<448x128xbf16, #tpu.memory_space<vmem>>, vector<448x128xbf16>
    %c0_4 = arith.constant 0 : index
    %c0_5 = arith.constant 0 : index
    %5 = vector.load %arg4[%c0_4, %c0_5] : memref<128x128xbf16, #tpu.memory_space<vmem>>, vector<128x128xbf16>
    %cst = arith.constant dense<0.000000e+00> : vector<448x128xf32>
    %6 = tpu.matmul %4, %5, %cst {dimension_numbers = #tpu.dot_dimension_numbers<[1], [0], [0], [1], [0, 0, 1, 1], [], []>} : vector<448x128xbf16>, vector<128x128xbf16>, vector<448x128xf32> -> vector<448x128xf32>
    %7 = arith.addf %3, %6 : vector<448x128xf32>
    %c0_6 = arith.constant 0 : index
    %c0_7 = arith.constant 0 : index
    %8 = vector.load %arg8[%c0_6, %c0_7] : memref<448x128xf32, #tpu.memory_space<vmem>>, vector<448x128xf32>
    tpu.vector_store %arg8[%c0_6, %c0_7], %7 {strides = array<i32>} : memref<448x128xf32, #tpu.memory_space<vmem>>, vector<448x128xf32>,
    %c0_i32_8 = arith.constant 0 : i32
    %9 = arith.cmpi eq, %arg2, %c0_i32_8 : i32
    %10 = arith.extui %9 : i1 to i32
    %c0_i32_9 = arith.constant 0 : i32
    %11 = arith.cmpi ne, %10, %c0_i32_9 : i32
    scf.if %11 {
      %c0_10 = arith.constant 0 : index
      %c0_11 = arith.constant 0 : index
      %12 = vector.load %arg8[%c0_10, %c0_11] : memref<448x128xf32, #tpu.memory_space<vmem>>, vector<448x128xf32>
      %c0_12 = arith.constant 0 : index
      %c0_13 = arith.constant 0 : index
      %13 = vector.load %arg5[%c0_12, %c0_13] : memref<1x128xf32, #tpu.memory_space<vmem>>, vector<1x128xf32>
      %14 = vector.broadcast %13 : vector<1x128xf32> to vector<448x128xf32>
      %15 = arith.mulf %12, %14 : vector<448x128xf32>
      %c0_14 = arith.constant 0 : index
      %c0_15 = arith.constant 0 : index
      %16 = vector.load %arg6[%c0_14, %c0_15] : memref<1x128xf32, #tpu.memory_space<vmem>>, vector<1x128xf32>
      %17 = vector.broadcast %16 : vector<1x128xf32> to vector<448x128xf32>
      %18 = arith.addf %15, %17 : vector<448x128xf32>
      %cst_16 = arith.constant 0.000000e+00 : f32
      %19 = vector.broadcast %cst_16 : f32 to vector<448x128xf32>
      %20 = arith.maximumf %18, %19 : vector<448x128xf32>
      %21 = arith.truncf %20 : vector<448x128xf32> to vector<448x128xbf16>
      %c0_17 = arith.constant 0 : index
      %c0_18 = arith.constant 0 : index
      %22 = vector.load %arg7[%c0_17, %c0_18] : memref<448x128xbf16, #tpu.memory_space<vmem>>, vector<448x128xbf16>
      tpu.vector_store %arg7[%c0_17, %c0_18], %21 {strides = array<i32>} : memref<448x128xbf16, #tpu.memory_space<vmem>>, vector<448x128xbf16>,
    } else {
    }
    return
  }
  func.func @transform_0(%arg0: i32, %arg1: i32, %arg2: i32) -> (i32, i32) {
    %c0_i32 = arith.constant 0 : i32
    return %arg0, %arg2 : i32, i32
  }
  func.func @transform_1(%arg0: i32, %arg1: i32, %arg2: i32) -> (i32, i32) {
    %c0_i32 = arith.constant 0 : i32
    return %arg2, %arg1 : i32, i32
  }
  func.func @transform_2(%arg0: i32, %arg1: i32, %arg2: i32) -> (i32, i32) {
    %c0_i32 = arith.constant 0 : i32
    %c0_i32_0 = arith.constant 0 : i32
    return %c0_i32, %arg1 : i32, i32
  }
  func.func @transform_3(%arg0: i32, %arg1: i32, %arg2: i32) -> (i32, i32) {
    %c0_i32 = arith.constant 0 : i32
    %c0_i32_0 = arith.constant 0 : i32
    return %c0_i32, %arg1 : i32, i32
  }
  func.func @transform_4(%arg0: i32, %arg1: i32, %arg2: i32) -> (i32, i32) {
    %c0_i32 = arith.constant 0 : i32
    return %arg0, %arg1 : i32, i32
  }
}

</mosaic_0001>

<bundles_post_ra>
// kernel: matmul_bn_act.1
= control target key start
LH: loop header
LB: loop body
LE: loop exit
PB: predicated region body
PF: predicated region fallthrough
CT: control target
= control target key end

     0   :  { %s1893_s15 = smov 0   ;;  %s1895_s16 = smov 0   ;;  %s2142_s0 = inlined_call_operand.vmem [shape: bf16[12544,128], index: 0, kind: input, shape index: {}]   ;;  %s2143_s1 = inlined_call_operand.vmem [shape: bf16[128,128], index: 1, kind: input, shape index: {}]   ;;  %s2144_s2 = inlined_call_operand.vmem [shape: f32[1,128], index: 2, kind: input, shape index: {}]   ;;  %s2145_s3 = inlined_call_operand.vmem [shape: f32[1,128], index: 3, kind: input, shape index: {}]   ;;  %s2146_s4 = inlined_call_operand.vmem [shape: bf16[12544,128], index: 4, kind: output, shape index: {}]  }
   0x1   :  { %s1897_s17 = smov 0  }
   0x2 LB: > { %s33_s18 = sadd.s32 1, %s1862_s16  ;;  %p1442_p0 = scmp.ge.s32.totalorder %s1866_s17, 1  ;;  %s1866_s17 = sphi %s1897_s17, %s14_s17   ;;  %s1862_s16 = sphi %s1895_s16, %s2148_s16   ;;  %s1858_s15 = sphi %s1893_s15, %s2147_s15  }
   0x3   : > { %p35_p1 = scmp.ge.s32.totalorder %s33_s18, 28  ;;  %p221_p2 = scmp.lt.s32.totalorder %s1866_s17, 29 }
   0x5   : > { %s2150_s18 = smov (%p35_p1, %s33_s18), 0  ;;  %p222_p3 = pnand %p1442_p0, %p221_p2 }
   0x6   : > { %s267_s27 = smul.u32 (!%p222_p3), 56, %s1858_s15 }
   0x7   : > { %225 = sbr.rel (%p222_p3) target bundleno = 291 (0x123), region = 36 }
   0x8   : > { %p268_p4 = scmp.lt.s32.totalorder (!%p222_p3), %s267_s27, 1567 }
   0xc   : > { %v1626_v0 = vld [vmem:[%s2143_s1 + $0x38] sm:$0xff]  ;;  %v1625_v1 = vld [vmem:[%s2143_s1 + $0x30] sm:$0xff]  ;;  %v1624_v2 = vld [vmem:[%s2143_s1 + $0x28] sm:$0xff]  ;;  %s2152_s27 = smov (!%p268_p4, %s267_s27), 1567 }
   0xd   : > { %704 = vmatpush.bf16.msra.mxu0 %v1626_v0  ;;  %1794 = vmatpush.bf16.msra.mxu1 %v1626_v0  ;;  %v1623_v3 = vld [vmem:[%s2143_s1 + $0x20] sm:$0xff]  ;;  %v1622_v4 = vld [vmem:[%s2143_s1 + $0x18] sm:$0xff]  ;;  %v1621_v5 = vld [vmem:[%s2143_s1 + $0x10] sm:$0xff]  ;;  %s1443_s8 = sshll.u32 %s2152_s27, 2 }
   0xe   : > { %1795 = vmatpush.bf16.msra.mxu2 %v1626_v0  ;;  %1796 = vmatpush.bf16.msra.mxu3 %v1626_v0  ;;  %v1620_v6 = vld [vmem:[%s2143_s1 + $0x8] sm:$0xff]  ;;  %v1619_v7 = vld [vmem:[%s2143_s1] sm:$0xff]  ;;  %s1946_s13 = scalar_lea.vmem %s2142_s0, %s1443_s8  ;;  %s2001_s23 = scalar_lea.vmem %s2146_s4, %s1443_s8 }
   0xf   : > { %v1591_v8 = vld [vmem:[%s1946_s13] sm:$0xff]  ;;  %v1598_v9 = vld [vmem:[%s1946_s13 + $0x38] sm:$0xff]  ;;  %v1605_v10 = vld [vmem:[%s1946_s13 + $0x70] sm:$0xff] }
  0x10   : > { %v1612_v11 = vld [vmem:[%s1946_s13 + $0xa8] sm:$0xff]  ;;  %v1599_v13 = vld [vmem:[%s1946_s13 + $0x40] sm:$0xff]  ;;  %v1606_v14 = vld [vmem:[%s1946_s13 + $0x78] sm:$0xff] }
  0x11   : > { %705 = vmatpush.bf16.msra.mxu0 %v1625_v1  ;;  %1797 = vmatpush.bf16.msra.mxu1 %v1625_v1  ;;  %v1592_v12 = vld [vmem:[%s1946_s13 + $0x8] sm:$0xff]  ;;  %v1613_v15 = vld [vmem:[%s1946_s13 + $0xb0] sm:$0xff]  ;;  %v1607_v18 = vld [vmem:[%s1946_s13 + $0x80] sm:$0xff] }
  0x12   : > { %1798 = vmatpush.bf16.msra.mxu2 %v1625_v1  ;;  %1799 = vmatpush.bf16.msra.mxu3 %v1625_v1  ;;  %v1593_v16 = vld [vmem:[%s1946_s13 + $0x10] sm:$0xff]  ;;  %v1600_v17 = vld [vmem:[%s1946_s13 + $0x48] sm:$0xff]  ;;  %v1614_v19 = vld [vmem:[%s1946_s13 + $0xb8] sm:$0xff] }
  0x13   : > { %v1594_v20 = vld [vmem:[%s1946_s13 + $0x18] sm:$0xff]  ;;  %v1601_v21 = vld [vmem:[%s1946_s13 + $0x50] sm:$0xff]  ;;  %v1608_v22 = vld [vmem:[%s1946_s13 + $0x88] sm:$0xff] }
  0x14   : > { %v1615_v23 = vld [vmem:[%s1946_s13 + $0xc0] sm:$0xff]  ;;  %v1602_v25 = vld [vmem:[%s1946_s13 + $0x58] sm:$0xff]  ;;  %v1609_v26 = vld [vmem:[%s1946_s13 + $0x90] sm:$0xff] }
  0x15   : > { %706 = vmatpush.bf16.msra.mxu0 %v1624_v2  ;;  %1800 = vmatpush.bf16.msra.mxu1 %v1624_v2  ;;  %v1595_v24 = vld [vmem:[%s1946_s13 + $0x20] sm:$0xff]  ;;  %v1616_v27 = vld [vmem:[%s1946_s13 + $0xc8] sm:$0xff]  ;;  %v1610_v30 = vld [vmem:[%s1946_s13 + $0x98] sm:$0xff] }
  0x16   : > { %1801 = vmatpush.bf16.msra.mxu2 %v1624_v2  ;;  %1802 = vmatpush.bf16.msra.mxu3 %v1624_v2  ;;  %v1596_v28 = vld [vmem:[%s1946_s13 + $0x28] sm:$0xff]  ;;  %v1603_v29 = vld [vmem:[%s1946_s13 + $0x60] sm:$0xff]  ;;  %v1617_v31 = vld [vmem:[%s1946_s13 + $0xd0] sm:$0xff] }
  0x17   : > { %v1597_v32 = vld [vmem:[%s1946_s13 + $0x30] sm:$0xff]  ;;  %v1604_v33 = vld [vmem:[%s1946_s13 + $0x68] sm:$0xff]  ;;  %v1611_v34 = vld [vmem:[%s1946_s13 + $0xa0] sm:$0xff] }
  0x18   : > { %v1618_v35 = vld [vmem:[%s1946_s13 + $0xd8] sm:$0xff]  ;;  %v1979_v38 = vld [vmem:[%s2144_s2] ss:$0 sm:$0xff] }
  0x19   : > { %707 = vmatpush.bf16.msra.mxu0 %v1623_v3  ;;  %1803 = vmatpush.bf16.msra.mxu1 %v1623_v3  ;;  %v1985_v40 = vld [vmem:[%s2145_s3] ss:$0 sm:$0xff] }
  0x1a   : > { %1804 = vmatpush.bf16.msra.mxu2 %v1623_v3  ;;  %1805 = vmatpush.bf16.msra.mxu3 %v1623_v3 }
  0x1d   : > { %708 = vmatpush.bf16.msra.mxu0 %v1622_v4  ;;  %1806 = vmatpush.bf16.msra.mxu1 %v1622_v4 }
  0x1e   : > { %1807 = vmatpush.bf16.msra.mxu2 %v1622_v4  ;;  %1808 = vmatpush.bf16.msra.mxu3 %v1622_v4 }
  0x21   : > { %709 = vmatpush.bf16.msra.mxu0 %v1621_v5  ;;  %1809 = vmatpush.bf16.msra.mxu1 %v1621_v5 }
  0x22   : > { %1810 = vmatpush.bf16.msra.mxu2 %v1621_v5  ;;  %1811 = vmatpush.bf16.msra.mxu3 %v1621_v5 }
  0x25   : > { %710 = vmatpush.bf16.msra.mxu0 %v1620_v6  ;;  %1812 = vmatpush.bf16.msra.mxu1 %v1620_v6 }
  0x26   : > { %1813 = vmatpush.bf16.msra.mxu2 %v1620_v6  ;;  %1814 = vmatpush.bf16.msra.mxu3 %v1620_v6 }
  0x29   : > { %711 = vmatpush.bf16.msra.mxu0 %v1619_v7  ;;  %1815 = vmatpush.bf16.msra.mxu1 %v1619_v7 }
  0x2a   : > { %1816 = vmatpush.bf16.msra.mxu2 %v1619_v7  ;;  %1817 = vmatpush.bf16.msra.mxu3 %v1619_v7 }
  0x2c   : > { %712 = vmatmul.bf16.vlgmr.msra.gmra.mxu0 %v1591_v8  ;;  %747 = vmatmul.bf16.vlgmr.msra.gmra.mxu1 %v1598_v9 }
  0x2d   : > { %782 = vmatmul.bf16.vlgmr.msra.gmra.mxu2 %v1605_v10  ;;  %817 = vmatmul.bf16.vlgmr.msra.gmra.mxu3 %v1612_v11 }
  0x3c   : > { %717 = vmatmul.bf16.gmra.mxu0 %v1592_v12  ;;  %752 = vmatmul.bf16.gmra.mxu1 %v1599_v13 }
  0x3d   : > { %787 = vmatmul.bf16.gmra.mxu2 %v1606_v14  ;;  %822 = vmatmul.bf16.gmra.mxu3 %v1613_v15 }
  0x4c   : > { %722 = vmatmul.bf16.gmra.mxu0 %v1593_v16  ;;  %757 = vmatmul.bf16.gmra.mxu1 %v1600_v17 }
  0x4d   : > { %792 = vmatmul.bf16.gmra.mxu2 %v1607_v18  ;;  %827 = vmatmul.bf16.gmra.mxu3 %v1614_v19 }
  0x5c   : > { %727 = vmatmul.bf16.gmra.mxu0 %v1594_v20  ;;  %762 = vmatmul.bf16.gmra.mxu1 %v1601_v21 }
  0x5d   : > { %797 = vmatmul.bf16.gmra.mxu2 %v1608_v22  ;;  %832 = vmatmul.bf16.gmra.mxu3 %v1615_v23 }
  0x6c   : > { %732 = vmatmul.bf16.gmra.mxu0 %v1595_v24  ;;  %767 = vmatmul.bf16.gmra.mxu1 %v1602_v25 }
  0x6d   : > { %802 = vmatmul.bf16.gmra.mxu2 %v1609_v26  ;;  %837 = vmatmul.bf16.gmra.mxu3 %v1616_v27 }
  0x7c   : > { %737 = vmatmul.bf16.gmra.mxu0 %v1596_v28  ;;  %772 = vmatmul.bf16.gmra.mxu1 %v1603_v29 }
  0x7d   : > { %807 = vmatmul.bf16.gmra.mxu2 %v1610_v30  ;;  %842 = vmatmul.bf16.gmra.mxu3 %v1617_v31 }
  0x8c   : > { %742 = vmatmul.bf16.gmra.mxu0 %v1597_v32  ;;  %777 = vmatmul.bf16.gmra.mxu1 %v1604_v33 }
  0x8d   : > { %812 = vmatmul.bf16.gmra.mxu2 %v1611_v34  ;;  %847 = vmatmul.bf16.gmra.mxu3 %v1618_v35 }
  0xa9   : > { %v713_v36 = vpop.f32.mrf.mxu0  ;;  %v748_v37 = vpop.f32.mrf.mxu1 }
  0xaa   : > { %v1028_v39 = vmul.f32 %v1979_v38, %v713_v36  ;;  %v1042_v41 = vmul.f32 %v1979_v38, %v748_v37 }
  0xac   : > { %v1088_v46 = vadd.f32 %v1985_v40, %v1028_v39  ;;  %v1102_v47 = vadd.f32 %v1985_v40, %v1042_v41 }
  0xae   : > { %v1144_v54 = vmax.f32 %v1088_v46, 0.0  ;;  %v1158_v55 = vmax.f32 %v1102_v47, 0.0 }
  0xb0   : > { %v783_v42 = vpop.f32.mrf.mxu2  ;;  %v818_v43 = vpop.f32.mrf.mxu3 }
  0xb1   : > { %v715_v44 = vpop.f32.mrf.mxu0  ;;  %v750_v45 = vpop.f32.mrf.mxu1  ;;  %v1056_v52 = vmul.f32 %v1979_v38, %v783_v42  ;;  %v1070_v53 = vmul.f32 %v1979_v38, %v818_v43 }
  0xb2   : > { %v1029_v48 = vmul.f32 %v1979_v38, %v715_v44  ;;  %v1043_v49 = vmul.f32 %v1979_v38, %v750_v45 }
  0xb3   : > { %v1116_v62 = vadd.f32 %v1985_v40, %v1056_v52  ;;  %v1130_v63 = vadd.f32 %v1985_v40, %v1070_v53 }
  0xb4   : > { %v1089_v50 = vadd.f32 %v1985_v40, %v1029_v48  ;;  %v1103_v51 = vadd.f32 %v1985_v40, %v1043_v49 }
  0xb5   : > { %v1172_v6 = vmax.f32 %v1116_v62, 0.0  ;;  %v1186_v7 = vmax.f32 %v1130_v63, 0.0 }
  0xb6   : > { %v1145_v56 = vmax.f32 %v1089_v50, 0.0  ;;  %v1159_v57 = vmax.f32 %v1103_v51, 0.0 }
  0xb8   : > { %v1630_v58 = vpack.c.bf16 %v1145_v56, %v1144_v54  ;;  %v1665_v59 = vpack.c.bf16 %v1159_v57, %v1158_v55  ;;  %v785_v60 = vpop.f32.mrf.mxu2  ;;  %v820_v61 = vpop.f32.mrf.mxu3 }
  0xb9   : > { %v1057_v0 = vmul.f32 %v1979_v38, %v785_v60  ;;  %v1071_v1 = vmul.f32 %v1979_v38, %v820_v61  ;;  %v718_v2 = vpop.f32.mrf.mxu0  ;;  %v753_v3 = vpop.f32.mrf.mxu1 }
  0xba   : > { %1631 = vst [vmem:[%s2001_s23] sm:$0xff] %v1630_v58   ;;  %v1030_v10 = vmul.f32 %v1979_v38, %v718_v2  ;;  %v1044_v11 = vmul.f32 %v1979_v38, %v753_v3 }
  0xbb   : > { %1773 = vst [vmem:[%s2001_s23 + $0x38] sm:$0xff] %v1665_v59   ;;  %v1117_v4 = vadd.f32 %v1985_v40, %v1057_v0  ;;  %v1131_v5 = vadd.f32 %v1985_v40, %v1071_v1 }
  0xbc   : > { %v1090_v18 = vadd.f32 %v1985_v40, %v1030_v10  ;;  %v1104_v19 = vadd.f32 %v1985_v40, %v1044_v11 }
  0xbd   : > { %v1173_v8 = vmax.f32 %v1117_v4, 0.0  ;;  %v1187_v9 = vmax.f32 %v1131_v5, 0.0 }
  0xbe   : > { %v1146_v26 = vmax.f32 %v1090_v18, 0.0  ;;  %v1160_v27 = vmax.f32 %v1104_v19, 0.0 }
  0xbf   : > { %v1700_v12 = vpack.c.bf16 %v1173_v8, %v1172_v6  ;;  %v1735_v13 = vpack.c.bf16 %v1187_v9, %v1186_v7 }
  0xc0   : > { %v788_v14 = vpop.f32.mrf.mxu2  ;;  %v823_v15 = vpop.f32.mrf.mxu3 }
  0xc1   : > { %1780 = vst [vmem:[%s2001_s23 + $0x70] sm:$0xff] %v1700_v12   ;;  %v720_v16 = vpop.f32.mrf.mxu0  ;;  %v755_v17 = vpop.f32.mrf.mxu1  ;;  %v1058_v24 = vmul.f32 %v1979_v38, %v788_v14  ;;  %v1072_v25 = vmul.f32 %v1979_v38, %v823_v15 }
  0xc2   : > { %1787 = vst [vmem:[%s2001_s23 + $0xa8] sm:$0xff] %v1735_v13   ;;  %v1031_v20 = vmul.f32 %v1979_v38, %v720_v16  ;;  %v1045_v21 = vmul.f32 %v1979_v38, %v755_v17 }
  0xc3   : > { %v1118_v34 = vadd.f32 %v1985_v40, %v1058_v24  ;;  %v1132_v35 = vadd.f32 %v1985_v40, %v1072_v25 }
  0xc4   : > { %v1091_v22 = vadd.f32 %v1985_v40, %v1031_v20  ;;  %v1105_v23 = vadd.f32 %v1985_v40, %v1045_v21 }
  0xc5   : > { %v1174_v44 = vmax.f32 %v1118_v34, 0.0  ;;  %v1188_v45 = vmax.f32 %v1132_v35, 0.0 }
  0xc6   : > { %v1147_v28 = vmax.f32 %v1091_v22, 0.0  ;;  %v1161_v29 = vmax.f32 %v1105_v23, 0.0 }
  0xc8   : > { %v1635_v30 = vpack.c.bf16 %v1147_v28, %v1146_v26  ;;  %v1670_v31 = vpack.c.bf16 %v1161_v29, %v1160_v27  ;;  %v790_v32 = vpop.f32.mrf.mxu2  ;;  %v825_v33 = vpop.f32.mrf.mxu3 }
  0xc9   : > { %v1059_v36 = vmul.f32 %v1979_v38, %v790_v32  ;;  %v1073_v37 = vmul.f32 %v1979_v38, %v825_v33  ;;  %v723_v39 = vpop.f32.mrf.mxu0  ;;  %v758_v41 = vpop.f32.mrf.mxu1 }
  0xca   : > { %1767 = vst [vmem:[%s2001_s23 + $0x8] sm:$0xff] %v1635_v30   ;;  %v1032_v48 = vmul.f32 %v1979_v38, %v723_v39  ;;  %v1046_v49 = vmul.f32 %v1979_v38, %v758_v41 }
  0xcb   : > { %1774 = vst [vmem:[%s2001_s23 + $0x40] sm:$0xff] %v1670_v31   ;;  %v1119_v42 = vadd.f32 %v1985_v40, %v1059_v36  ;;  %v1133_v43 = vadd.f32 %v1985_v40, %v1073_v37 }
  0xcc   : > { %v1092_v56 = vadd.f32 %v1985_v40, %v1032_v48  ;;  %v1106_v57 = vadd.f32 %v1985_v40, %v1046_v49 }
  0xcd   : > { %v1175_v46 = vmax.f32 %v1119_v42, 0.0  ;;  %v1189_v47 = vmax.f32 %v1133_v43, 0.0 }
  0xce   : > { %v1148_v0 = vmax.f32 %v1092_v56, 0.0  ;;  %v1162_v1 = vmax.f32 %v1106_v57, 0.0 }
  0xcf   : > { %v1705_v50 = vpack.c.bf16 %v1175_v46, %v1174_v44  ;;  %v1740_v51 = vpack.c.bf16 %v1189_v47, %v1188_v45 }
  0xd0   : > { %v793_v52 = vpop.f32.mrf.mxu2  ;;  %v828_v53 = vpop.f32.mrf.mxu3 }
  0xd1   : > { %1781 = vst [vmem:[%s2001_s23 + $0x78] sm:$0xff] %v1705_v50   ;;  %v725_v54 = vpop.f32.mrf.mxu0  ;;  %v760_v55 = vpop.f32.mrf.mxu1  ;;  %v1060_v62 = vmul.f32 %v1979_v38, %v793_v52  ;;  %v1074_v63 = vmul.f32 %v1979_v38, %v828_v53 }
  0xd2   : > { %1788 = vst [vmem:[%s2001_s23 + $0xb0] sm:$0xff] %v1740_v51   ;;  %v1033_v58 = vmul.f32 %v1979_v38, %v725_v54  ;;  %v1047_v59 = vmul.f32 %v1979_v38, %v760_v55 }
  0xd3   : > { %v1120_v8 = vadd.f32 %v1985_v40, %v1060_v62  ;;  %v1134_v9 = vadd.f32 %v1985_v40, %v1074_v63 }
  0xd4   : > { %v1093_v60 = vadd.f32 %v1985_v40, %v1033_v58  ;;  %v1107_v61 = vadd.f32 %v1985_v40, %v1047_v59 }
  0xd5   : > { %v1176_v16 = vmax.f32 %v1120_v8, 0.0  ;;  %v1190_v17 = vmax.f32 %v1134_v9, 0.0 }
  0xd6   : > { %v1149_v2 = vmax.f32 %v1093_v60, 0.0  ;;  %v1163_v3 = vmax.f32 %v1107_v61, 0.0 }
  0xd8   : > { %v1640_v4 = vpack.c.bf16 %v1149_v2, %v1148_v0  ;;  %v1675_v5 = vpack.c.bf16 %v1163_v3, %v1162_v1  ;;  %v795_v6 = vpop.f32.mrf.mxu2  ;;  %v830_v7 = vpop.f32.mrf.mxu3 }
  0xd9   : > { %v1061_v10 = vmul.f32 %v1979_v38, %v795_v6  ;;  %v1075_v11 = vmul.f32 %v1979_v38, %v830_v7  ;;  %v728_v12 = vpop.f32.mrf.mxu0  ;;  %v763_v13 = vpop.f32.mrf.mxu1 }
  0xda   : > { %1768 = vst [vmem:[%s2001_s23 + $0x10] sm:$0xff] %v1640_v4   ;;  %v1034_v20 = vmul.f32 %v1979_v38, %v728_v12  ;;  %v1048_v21 = vmul.f32 %v1979_v38, %v763_v13 }
  0xdb   : > { %1775 = vst [vmem:[%s2001_s23 + $0x48] sm:$0xff] %v1675_v5   ;;  %v1121_v14 = vadd.f32 %v1985_v40, %v1061_v10  ;;  %v1135_v15 = vadd.f32 %v1985_v40, %v1075_v11 }
  0xdc   : > { %v1094_v28 = vadd.f32 %v1985_v40, %v1034_v20  ;;  %v1108_v29 = vadd.f32 %v1985_v40, %v1048_v21 }
  0xdd   : > { %v1177_v18 = vmax.f32 %v1121_v14, 0.0  ;;  %v1191_v19 = vmax.f32 %v1135_v15, 0.0 }
  0xde   : > { %v1150_v36 = vmax.f32 %v1094_v28, 0.0  ;;  %v1164_v37 = vmax.f32 %v1108_v29, 0.0 }
  0xdf   : > { %v1710_v22 = vpack.c.bf16 %v1177_v18, %v1176_v16  ;;  %v1745_v23 = vpack.c.bf16 %v1191_v19, %v1190_v17 }
  0xe0   : > { %v798_v24 = vpop.f32.mrf.mxu2  ;;  %v833_v25 = vpop.f32.mrf.mxu3 }
  0xe1   : > { %1782 = vst [vmem:[%s2001_s23 + $0x80] sm:$0xff] %v1710_v22   ;;  %v730_v26 = vpop.f32.mrf.mxu0  ;;  %v765_v27 = vpop.f32.mrf.mxu1  ;;  %v1062_v34 = vmul.f32 %v1979_v38, %v798_v24  ;;  %v1076_v35 = vmul.f32 %v1979_v38, %v833_v25 }
  0xe2   : > { %1789 = vst [vmem:[%s2001_s23 + $0xb8] sm:$0xff] %v1745_v23   ;;  %v1035_v30 = vmul.f32 %v1979_v38, %v730_v26  ;;  %v1049_v31 = vmul.f32 %v1979_v38, %v765_v27 }
  0xe3   : > { %v1122_v46 = vadd.f32 %v1985_v40, %v1062_v34  ;;  %v1136_v47 = vadd.f32 %v1985_v40, %v1076_v35 }
  0xe4   : > { %v1095_v32 = vadd.f32 %v1985_v40, %v1035_v30  ;;  %v1109_v33 = vadd.f32 %v1985_v40, %v1049_v31 }
  0xe5   : > { %v1178_v54 = vmax.f32 %v1122_v46, 0.0  ;;  %v1192_v55 = vmax.f32 %v1136_v47, 0.0 }
  0xe6   : > { %v1151_v39 = vmax.f32 %v1095_v32, 0.0  ;;  %v1165_v41 = vmax.f32 %v1109_v33, 0.0 }
  0xe8   : > { %v1645_v42 = vpack.c.bf16 %v1151_v39, %v1150_v36  ;;  %v1680_v43 = vpack.c.bf16 %v1165_v41, %v1164_v37  ;;  %v800_v44 = vpop.f32.mrf.mxu2  ;;  %v835_v45 = vpop.f32.mrf.mxu3 }
  0xe9   : > { %v1063_v48 = vmul.f32 %v1979_v38, %v800_v44  ;;  %v1077_v49 = vmul.f32 %v1979_v38, %v835_v45  ;;  %v733_v50 = vpop.f32.mrf.mxu0  ;;  %v768_v51 = vpop.f32.mrf.mxu1 }
  0xea   : > { %1769 = vst [vmem:[%s2001_s23 + $0x18] sm:$0xff] %v1645_v42   ;;  %v1036_v58 = vmul.f32 %v1979_v38, %v733_v50  ;;  %v1050_v59 = vmul.f32 %v1979_v38, %v768_v51 }
  0xeb   : > { %1776 = vst [vmem:[%s2001_s23 + $0x50] sm:$0xff] %v1680_v43   ;;  %v1123_v52 = vadd.f32 %v1985_v40, %v1063_v48  ;;  %v1137_v53 = vadd.f32 %v1985_v40, %v1077_v49 }
  0xec   : > { %v1096_v2 = vadd.f32 %v1985_v40, %v1036_v58  ;;  %v1110_v3 = vadd.f32 %v1985_v40, %v1050_v59 }
  0xed   : > { %v1179_v56 = vmax.f32 %v1123_v52, 0.0  ;;  %v1193_v57 = vmax.f32 %v1137_v53, 0.0 }
  0xee   : > { %v1152_v10 = vmax.f32 %v1096_v2, 0.0  ;;  %v1166_v11 = vmax.f32 %v1110_v3, 0.0 }
  0xef   : > { %v1715_v60 = vpack.c.bf16 %v1179_v56, %v1178_v54  ;;  %v1750_v61 = vpack.c.bf16 %v1193_v57, %v1192_v55 }
  0xf0   : > { %v803_v62 = vpop.f32.mrf.mxu2  ;;  %v838_v63 = vpop.f32.mrf.mxu3 }
  0xf1   : > { %1783 = vst [vmem:[%s2001_s23 + $0x88] sm:$0xff] %v1715_v60   ;;  %v735_v0 = vpop.f32.mrf.mxu0  ;;  %v770_v1 = vpop.f32.mrf.mxu1  ;;  %v1064_v8 = vmul.f32 %v1979_v38, %v803_v62  ;;  %v1078_v9 = vmul.f32 %v1979_v38, %v838_v63 }
  0xf2   : > { %1790 = vst [vmem:[%s2001_s23 + $0xc0] sm:$0xff] %v1750_v61   ;;  %v1037_v4 = vmul.f32 %v1979_v38, %v735_v0  ;;  %v1051_v5 = vmul.f32 %v1979_v38, %v770_v1 }
  0xf3   : > { %v1124_v18 = vadd.f32 %v1985_v40, %v1064_v8  ;;  %v1138_v19 = vadd.f32 %v1985_v40, %v1078_v9 }
  0xf4   : > { %v1097_v6 = vadd.f32 %v1985_v40, %v1037_v4  ;;  %v1111_v7 = vadd.f32 %v1985_v40, %v1051_v5 }
  0xf5   : > { %v1180_v26 = vmax.f32 %v1124_v18, 0.0  ;;  %v1194_v27 = vmax.f32 %v1138_v19, 0.0 }
  0xf6   : > { %v1153_v12 = vmax.f32 %v1097_v6, 0.0  ;;  %v1167_v13 = vmax.f32 %v1111_v7, 0.0 }
  0xf8   : > { %v1650_v14 = vpack.c.bf16 %v1153_v12, %v1152_v10  ;;  %v1685_v15 = vpack.c.bf16 %v1167_v13, %v1166_v11  ;;  %v805_v16 = vpop.f32.mrf.mxu2  ;;  %v840_v17 = vpop.f32.mrf.mxu3 }
  0xf9   : > { %v1065_v20 = vmul.f32 %v1979_v38, %v805_v16  ;;  %v1079_v21 = vmul.f32 %v1979_v38, %v840_v17  ;;  %v738_v22 = vpop.f32.mrf.mxu0  ;;  %v773_v23 = vpop.f32.mrf.mxu1 }
  0xfa   : > { %1770 = vst [vmem:[%s2001_s23 + $0x20] sm:$0xff] %v1650_v14   ;;  %v1038_v30 = vmul.f32 %v1979_v38, %v738_v22  ;;  %v1052_v31 = vmul.f32 %v1979_v38, %v773_v23 }
  0xfb   : > { %1777 = vst [vmem:[%s2001_s23 + $0x58] sm:$0xff] %v1685_v15   ;;  %v1125_v24 = vadd.f32 %v1985_v40, %v1065_v20  ;;  %v1139_v25 = vadd.f32 %v1985_v40, %v1079_v21 }
  0xfc   : > { %v1098_v39 = vadd.f32 %v1985_v40, %v1038_v30  ;;  %v1112_v41 = vadd.f32 %v1985_v40, %v1052_v31 }
  0xfd   : > { %v1181_v28 = vmax.f32 %v1125_v24, 0.0  ;;  %v1195_v29 = vmax.f32 %v1139_v25, 0.0 }
  0xfe   : > { %v1154_v48 = vmax.f32 %v1098_v39, 0.0  ;;  %v1168_v49 = vmax.f32 %v1112_v41, 0.0 }
  0xff   : > { %v1720_v32 = vpack.c.bf16 %v1181_v28, %v1180_v26  ;;  %v1755_v33 = vpack.c.bf16 %v1195_v29, %v1194_v27 }
 0x100   : > { %v808_v34 = vpop.f32.mrf.mxu2  ;;  %v843_v35 = vpop.f32.mrf.mxu3 }
 0x101   : > { %1784 = vst [vmem:[%s2001_s23 + $0x90] sm:$0xff] %v1720_v32   ;;  %v740_v36 = vpop.f32.mrf.mxu0  ;;  %v775_v37 = vpop.f32.mrf.mxu1  ;;  %v1066_v46 = vmul.f32 %v1979_v38, %v808_v34  ;;  %v1080_v47 = vmul.f32 %v1979_v38, %v843_v35 }
 0x102   : > { %1791 = vst [vmem:[%s2001_s23 + $0xc8] sm:$0xff] %v1755_v33   ;;  %v1039_v42 = vmul.f32 %v1979_v38, %v740_v36  ;;  %v1053_v43 = vmul.f32 %v1979_v38, %v775_v37 }
 0x103   : > { %v1126_v56 = vadd.f32 %v1985_v40, %v1066_v46  ;;  %v1140_v57 = vadd.f32 %v1985_v40, %v1080_v47 }
 0x104   : > { %v1099_v44 = vadd.f32 %v1985_v40, %v1039_v42  ;;  %v1113_v45 = vadd.f32 %v1985_v40, %v1053_v43 }
 0x105   : > { %v1182_v0 = vmax.f32 %v1126_v56, 0.0  ;;  %v1196_v1 = vmax.f32 %v1140_v57, 0.0 }
 0x106   : > { %v1155_v50 = vmax.f32 %v1099_v44, 0.0  ;;  %v1169_v51 = vmax.f32 %v1113_v45, 0.0 }
 0x108   : > { %v1655_v52 = vpack.c.bf16 %v1155_v50, %v1154_v48  ;;  %v1690_v53 = vpack.c.bf16 %v1169_v51, %v1168_v49  ;;  %v810_v54 = vpop.f32.mrf.mxu2  ;;  %v845_v55 = vpop.f32.mrf.mxu3 }
 0x109   : > { %v1067_v58 = vmul.f32 %v1979_v38, %v810_v54  ;;  %v1081_v59 = vmul.f32 %v1979_v38, %v845_v55  ;;  %v743_v60 = vpop.f32.mrf.mxu0  ;;  %v778_v61 = vpop.f32.mrf.mxu1 }
 0x10a   : > { %1771 = vst [vmem:[%s2001_s23 + $0x28] sm:$0xff] %v1655_v52   ;;  %v1040_v4 = vmul.f32 %v1979_v38, %v743_v60  ;;  %v1054_v5 = vmul.f32 %v1979_v38, %v778_v61 }
 0x10b   : > { %1778 = vst [vmem:[%s2001_s23 + $0x60] sm:$0xff] %v1690_v53   ;;  %v1127_v62 = vadd.f32 %v1985_v40, %v1067_v58  ;;  %v1141_v63 = vadd.f32 %v1985_v40, %v1081_v59 }
 0x10c   : > { %v1100_v12 = vadd.f32 %v1985_v40, %v1040_v4  ;;  %v1114_v13 = vadd.f32 %v1985_v40, %v1054_v5 }
 0x10d   : > { %v1183_v2 = vmax.f32 %v1127_v62, 0.0  ;;  %v1197_v3 = vmax.f32 %v1141_v63, 0.0 }
 0x10e   : > { %v1156_v20 = vmax.f32 %v1100_v12, 0.0  ;;  %v1170_v21 = vmax.f32 %v1114_v13, 0.0 }
 0x10f   : > { %v1725_v6 = vpack.c.bf16 %v1183_v2, %v1182_v0  ;;  %v1760_v7 = vpack.c.bf16 %v1197_v3, %v1196_v1 }
 0x110   : > { %v813_v8 = vpop.f32.mrf.mxu2  ;;  %v848_v9 = vpop.f32.mrf.mxu3 }
 0x111   : > { %1785 = vst [vmem:[%s2001_s23 + $0x98] sm:$0xff] %v1725_v6   ;;  %v745_v10 = vpop.f32.mrf.mxu0  ;;  %v780_v11 = vpop.f32.mrf.mxu1  ;;  %v1068_v18 = vmul.f32 %v1979_v38, %v813_v8  ;;  %v1082_v19 = vmul.f32 %v1979_v38, %v848_v9 }
 0x112   : > { %1792 = vst [vmem:[%s2001_s23 + $0xd0] sm:$0xff] %v1760_v7   ;;  %v1041_v14 = vmul.f32 %v1979_v38, %v745_v10  ;;  %v1055_v15 = vmul.f32 %v1979_v38, %v780_v11 }
 0x113   : > { %v1128_v28 = vadd.f32 %v1985_v40, %v1068_v18  ;;  %v1142_v29 = vadd.f32 %v1985_v40, %v1082_v19 }
 0x114   : > { %v1101_v16 = vadd.f32 %v1985_v40, %v1041_v14  ;;  %v1115_v17 = vadd.f32 %v1985_v40, %v1055_v15 }
 0x115   : > { %v1184_v34 = vmax.f32 %v1128_v28, 0.0  ;;  %v1198_v35 = vmax.f32 %v1142_v29, 0.0 }
 0x116   : > { %v1157_v22 = vmax.f32 %v1101_v16, 0.0  ;;  %v1171_v23 = vmax.f32 %v1115_v17, 0.0 }
 0x118   : > { %v1660_v24 = vpack.c.bf16 %v1157_v22, %v1156_v20  ;;  %v1695_v25 = vpack.c.bf16 %v1171_v23, %v1170_v21  ;;  %v815_v26 = vpop.f32.mrf.mxu2  ;;  %v850_v27 = vpop.f32.mrf.mxu3 }
 0x119   : > { %v1069_v30 = vmul.f32 %v1979_v38, %v815_v26  ;;  %v1083_v31 = vmul.f32 %v1979_v38, %v850_v27 }
 0x11a   : > { %1772 = vst [vmem:[%s2001_s23 + $0x30] sm:$0xff] %v1660_v24  }
 0x11b   : > { %1779 = vst [vmem:[%s2001_s23 + $0x68] sm:$0xff] %v1695_v25   ;;  %v1129_v32 = vadd.f32 %v1985_v40, %v1069_v30  ;;  %v1143_v33 = vadd.f32 %v1985_v40, %v1083_v31 }
 0x11d   : > { %v1185_v36 = vmax.f32 %v1129_v32, 0.0  ;;  %v1199_v37 = vmax.f32 %v1143_v33, 0.0 }
 0x11f   : > { %v1730_v39 = vpack.c.bf16 %v1185_v36, %v1184_v34  ;;  %v1765_v41 = vpack.c.bf16 %v1199_v37, %v1198_v35 }
 0x121   : > { %1786 = vst [vmem:[%s2001_s23 + $0xa0] sm:$0xff] %v1730_v39  }
 0x122   : > { %1793 = vst [vmem:[%s2001_s23 + $0xd8] sm:$0xff] %v1765_v41  }
 0x123 PF: > { %s14_s17 = sadd.s32 1, %s1866_s17   ;;  %s2147_s15 = smov %s1862_s16 }
 0x124   : > { %p11_p5 = scmp.ge.s32.totalorder %s14_s17, 30   ;;  %s2148_s16 = smov %s2150_s18 }
 0x126   :  { %13 = sbr.rel (!%p11_p5) target bundleno = 2 (0x2), region = 83 }

</bundles_post_ra>
